<compile_context>
chip_gen: v7x
topology: tpu7x:2x2x1
jax: 0.10.0
libtpu: 0.0.40
codegen_flags: <defaults>
</compile_context>

<pallas_src>
import functools

import numpy as np
import jax
import jax.numpy as jnp
from jax.experimental import pallas as pl
from jax.experimental.pallas import tpu as pltpu

PMASK_SLOPE = 5.0


def _pick_block_rows(m, h, w, target_bytes=2 << 20):
    """Largest divisor of m whose (d, H, W) f32 output tile fits target_bytes,
    keeping >= 2 grid steps when possible (v7x has 2 TensorCores)."""
    per_row = h * w * 4
    best = 1
    for d in range(1, m + 1):
        if m % d:
            continue
        if d * per_row > target_bytes:
            continue
        if m >= 2 and m // d < 2:
            continue
        best = d
    return best


def _probmask_kernel(slope):
    def kernel(x0_ref, w_ref, o_ref):
        # x0_ref: [M, H]     full x[..., 0] slab (VMEM resident, fetched once)
        # w_ref : [H, W]     full ProbMask weight (VMEM resident, fetched once)
        # o_ref : [bm, H, W] output tile for this grid step
        bm = o_ref.shape[0]
        i = pl.program_id(0)
        # sigmoid(slope * weight) on the small [H, W] tile (EUP work ~H*W, not bm*H*W)
        sig = 1.0 / (1.0 + jnp.exp(-slope * w_ref[...]))
        # keep the 0 * x[..., 0:1] term for exact torch semantics (NaN/Inf propagate)
        xz = 0.0 * x0_ref[pl.ds(i * bm, bm), :]                  # [bm, H]
        o_ref[...] = xz[:, :, None] + sig[None, :, :]            # [bm, H, W]
    return kernel


@functools.partial(jax.jit, static_argnames=("slope", "block_rows"))
def probmask_forward(x, weight, slope=PMASK_SLOPE, block_rows=None):
    """ProbMask.forward: sigmoid(slope * (0 * x[..., 0:1] + weight)) -> [N, C, H, W]."""
    n, c, h, w = x.shape
    wh, ww = weight.shape[-2], weight.shape[-1]
    assert (wh, ww) == (h, w), "weight spatial dims must match x"
    m = n * c

    # Only the x[..., 0] slice participates in the op; don't stream the rest of x.
    x0 = x[..., 0].reshape(m, h).astype(jnp.float32)
    w2d = jnp.reshape(weight, (h, w)).astype(jnp.float32)

    bm = block_rows if block_rows is not None else _pick_block_rows(m, h, w)
    grid = (m // bm,)

    out = pl.pallas_call(
        _probmask_kernel(float(slope)),
        out_shape=jax.ShapeDtypeStruct((m, h, w), jnp.float32),
        grid=grid,
        in_specs=[
            pl.BlockSpec((m, h), lambda i: (0, 0)),   # x[..., 0]: constant block -> fetched once
            pl.BlockSpec((h, w), lambda i: (0, 0)),   # weight:     constant block -> fetched once
        ],
        out_specs=pl.BlockSpec((bm, h, w), lambda i: (i, 0, 0)),
        compiler_params=pltpu.CompilerParams(dimension_semantics=("parallel",)),
    )(x0, w2d)
    return out.reshape(n, c, h, w)


def init_probmask_weight(key, h, w, slope=PMASK_SLOPE, eps=1e-4):
    # torch reset_parameters: weight ~ U(eps, 1-eps); weight = -log(1/weight - 1) / slope
    # TODO(synk): torch stores the ProbMask weight as DoubleTensor (float64); TPU kernel uses float32.
    u = jax.random.uniform(key, (1, 1, h, w), minval=eps, maxval=1.0 - eps, dtype=jnp.float32)
    return -jnp.log(1.0 / u - 1.0) / slope


if __name__ == "__main__":
    N, C, H, W = 2, 4, 16, 16
    key = jax.random.PRNGKey(0)
    kx, kw = jax.random.split(key)
    x = jax.random.normal(kx, (N, C, H, W), dtype=jnp.float32)
    weight = init_probmask_weight(kw, H, W)                    # [1, 1, H, W]

    out = probmask_forward(x, weight)
    out = jax.block_until_ready(out)

    # --- reference (plain numpy, same broadcast as the torch module) ---
    xn = np.asarray(x, dtype=np.float32)
    wn = np.asarray(weight, dtype=np.float32).reshape(1, 1, H, W)
    logits = 0.0 * xn[..., 0:1] + wn                           # [N, C, H, W]
    ref = 1.0 / (1.0 + np.exp(-PMASK_SLOPE * logits))

    o = np.asarray(out)
    assert o.shape == (N, C, H, W)
    assert np.all(np.isfinite(o))
    assert np.max(np.abs(o - ref)) <= 1e-5

    print("KERNEL_OK")
</pallas_src>

<mosaic_0001>
module attributes {stable_mosaic.version = 11 : i64} {
  func.func @kernel(%arg0: i32, %arg1: memref<8x16xf32, #tpu.memory_space<vmem>>, %arg2: memref<16x16xf32, #tpu.memory_space<vmem>>, %arg3: memref<4x16x16xf32, #tpu.memory_space<vmem>>) attributes {dimension_semantics = [#tpu.dimension_semantics<parallel>], iteration_bounds = array<i64: 2>, scalar_prefetch = 0 : i64, scratch_operands = 0 : i64, tpu.core_type = #tpu.core_type<tc>, window_params = [{pipeline_mode = #tpu.pipeline_mode<synchronous>, transform_indices = @transform_0, window_bounds = array<i64: 8, 16>}, {pipeline_mode = #tpu.pipeline_mode<synchronous>, transform_indices = @transform_1, window_bounds = array<i64: 16, 16>}, {transform_indices = @transform_2, window_bounds = array<i64: 4, 16, 16>}]} {
    %c0 = arith.constant 0 : index
    %c0_0 = arith.constant 0 : index
    %0 = vector.load %arg2[%c0, %c0_0] : memref<16x16xf32, #tpu.memory_space<vmem>>, vector<16x16xf32>
    %cst = arith.constant -5.000000e+00 : f32
    %1 = vector.broadcast %cst : f32 to vector<16x16xf32>
    %2 = arith.mulf %1, %0 : vector<16x16xf32>
    %3 = math.exp %2 : vector<16x16xf32>
    %cst_1 = arith.constant 1.000000e+00 : f32
    %4 = vector.broadcast %cst_1 : f32 to vector<16x16xf32>
    %5 = arith.addf %4, %3 : vector<16x16xf32>
    %cst_2 = arith.constant 1.000000e+00 : f32
    %6 = vector.broadcast %cst_2 : f32 to vector<16x16xf32>
    %7 = arith.divf %6, %5 : vector<16x16xf32>
    %c4_i32 = arith.constant 4 : i32
    %8 = arith.muli %arg0, %c4_i32 : i32
    %9 = arith.index_cast %8 : i32 to index
    %c0_3 = arith.constant 0 : index
    %10 = vector.load %arg1[%9, %c0_3] : memref<8x16xf32, #tpu.memory_space<vmem>>, vector<4x16xf32>
    %cst_4 = arith.constant 0.000000e+00 : f32
    %11 = vector.broadcast %cst_4 : f32 to vector<4x16xf32>
    %12 = arith.mulf %11, %10 : vector<4x16xf32>
    %13 = vector.shape_cast %12 : vector<4x16xf32> to vector<4x16x1xf32>
    %14 = vector.shape_cast %7 : vector<16x16xf32> to vector<1x16x16xf32>
    %15 = vector.broadcast %13 : vector<4x16x1xf32> to vector<4x16x16xf32>
    %16 = vector.broadcast %14 : vector<1x16x16xf32> to vector<4x16x16xf32>
    %17 = arith.addf %15, %16 : vector<4x16x16xf32>
    %c0_5 = arith.constant 0 : index
    %c0_6 = arith.constant 0 : index
    %c0_7 = arith.constant 0 : index
    %18 = vector.load %arg3[%c0_5, %c0_6, %c0_7] : memref<4x16x16xf32, #tpu.memory_space<vmem>>, vector<4x16x16xf32>
    tpu.vector_store %arg3[%c0_5, %c0_6, %c0_7], %17 {strides = array<i32>} : memref<4x16x16xf32, #tpu.memory_space<vmem>>, vector<4x16x16xf32>,
    return
  }
  func.func @transform_0(%arg0: i32) -> (i32, i32) {
    %c0_i32 = arith.constant 0 : i32
    %c0_i32_0 = arith.constant 0 : i32
    %c0_i32_1 = arith.constant 0 : i32
    return %c0_i32, %c0_i32_0 : i32, i32
  }
  func.func @transform_1(%arg0: i32) -> (i32, i32) {
    %c0_i32 = arith.constant 0 : i32
    %c0_i32_0 = arith.constant 0 : i32
    %c0_i32_1 = arith.constant 0 : i32
    return %c0_i32, %c0_i32_0 : i32, i32
  }
  func.func @transform_2(%arg0: i32) -> (i32, i32, i32) {
    %c0_i32 = arith.constant 0 : i32
    %c0_i32_0 = arith.constant 0 : i32
    %c0_i32_1 = arith.constant 0 : i32
    return %arg0, %c0_i32, %c0_i32_0 : i32, i32, i32
  }
}

</mosaic_0001>

<bundles_post_ra>
// kernel: probmask_forward.1
= control target key start
LH: loop header
LB: loop body
LE: loop exit
PB: predicated region body
PF: predicated region fallthrough
CT: control target
= control target key end

     0   :  { %7 = vsyncpa [#allocation3], 0  ;;  %s533_s0 = inlined_call_operand.vmem [shape: f32[8,16], index: 0, kind: input, shape index: {}]   ;;  %s534_s1 = inlined_call_operand.vmem [shape: f32[16,16], index: 1, kind: input, shape index: {}]   ;;  %s535_s2 = inlined_call_operand.hbm [shape: f32[8,16,16], index: 2, kind: output, shape index: {}]  }
   0x1   :  { %9 = vsyncpa [#allocation3 + $0x1], 0  ;;  %s413_s9 = smov 0   ;;  %s415_s10 = smov 0  }
   0x2   :  { %s417_s11 = smov 0   ;;  %s419_s12 = smov 0  }
   0x3 LB: > { %s434_s13 = sadd.s32 4294967295, %s393_s12   ;;  %s269_s14 = sadd.s32 4294967294, %s393_s12   ;;  %s393_s12 = sphi %s419_s12, %s541_s12   ;;  %s389_s11 = sphi %s417_s11, %s540_s11   ;;  %s385_s10 = sphi %s415_s10, %s539_s10   ;;  %s381_s9 = sphi %s413_s9, %s538_s9  }
   0x4   : > { %s438_s15 = sadd.s32 1, %s393_s12   ;;  %s64_s16 = sadd.s32 1, %s389_s11 }
   0x5   : > { %s61_s17 = ssub.s32 %s393_s12, %s438_s15  ;;  %p74_p0 = scmp.ne.s32.totalorder %s389_s11, %s385_s10 }
   0x6   : > { %p62_p1 = scmp.eq.s32.totalorder %s61_s17, 0  ;;  %p75_p2 = scmp.eq.s32.totalorder %s434_s13, 1 }
   0x7   : > { %p80_p3 = scmp.ne.s32.totalorder %s385_s10, %s381_s9  ;;  %p81_p4 = scmp.eq.s32.totalorder %s269_s14, 1 }
   0x8   : > { %s449_s18 = scalar_select %p62_p1, %s389_s11, %s64_s16  }
   0x9   : > { %p451_p5 = por %p75_p2, %p74_p0  ;;  %p455_p6 = por %p81_p4, %p80_p3 }
   0xa   : > { %p271_p7 = scmp.ge.s32.totalorder %s393_s12, 1  ;;  %p105_p8 = scmp.lt.s32.totalorder %s393_s12, 3 }
   0xc   : > { %p106_p9 = pnand %p271_p7, %p105_p8 }
   0xd   : > { %s273_s21 = sshll.u32 (!%p106_p9), %s434_s13, 2  ;;  %v141_v0 = vlaneseq (!%p106_p9)  ;;  %v123_v12 = vld [vmem:[%s534_s1] sm:$0xff] (!%p106_p9)  ;;  %v124_v14 = vld [vmem:[%s534_s1 + $0x8] sm:$0xff] (!%p106_p9)  ;;  %s119_s29 = sand.u32 (!%p106_p9), 1, %s385_s10   ;;  %vm193_vm0 = vcmask (!%p106_p9), 130048  }
   0xe   : > { %109 = sbr.rel (%p106_p9) target bundleno = 165 (0xa5), region = 28  ;;  %s138_s24 = scalar_lea.vmem (!%p106_p9), %s533_s0, %s273_s21  ;;  %v125_v13 = vmul.f32 (!%p106_p9), -5.0, %v123_v12  ;;  %v126_v16 = vmul.f32 (!%p106_p9), -5.0, %v124_v14 }
   0xf   : > { %v139_v1 = vld [vmem:[%s138_s24] sm:$0xf] (!%p106_p9)  ;;  %v142_v2 = vshrl.u32 (!%p106_p9), %v141_v0, 7  ;;  %s272_s30 = sshll.u32 (!%p106_p9), %s119_s29, 6  ;;  %s281_s4 = sshll.u32 (!%p106_p9), %s434_s13, 10 }
  0x10   : > { %v140_v3 = vmul.f32 (!%p106_p9), 0.0, %v139_v1  ;;  %v127_v15 = vmul.f32 (!%p106_p9), 1.442695, %v125_v13  ;;  %v129_v17 = vmul.f32 (!%p106_p9), 1.442695, %v126_v16  ;;  %s121_s3 = scalar_lea.vmem (!%p106_p9), [#allocation2], %s272_s30  ;;  %s484_s8 = scalar_lea.hbm (!%p106_p9), %s535_s2, %s281_s4 }
  0x11   : > { %v154_v4 = vsub.s32 (!%p106_p9), 1, %v142_v2  ;;  %v143_v5 = vsub.s32 (!%p106_p9), 0, %v142_v2  ;;  %v165_v8 = vsub.s32 (!%p106_p9), 2, %v142_v2  ;;  %v176_v10 = vsub.s32 (!%p106_p9), 3, %v142_v2  ;;  %s217_s5 = sshll.u32 (!%p106_p9), %s121_s3, 4  ;;  %s492_s13 = scalar_lea.sflag (!%p106_p9), [#allocation3], %s119_s29  ;;  %s486_s5 = int_to_ptr.vmem [resolvable:$true] %s217_s5 }
  0x12   : > { %323 = vpow2.f32 (!%p106_p9), %v127_v15  ;;  %s331_s14 = scalar_lea.vmem (!%p106_p9), %s486_s5, 1024  ;;  %s395_s16 = smov (!%p106_p9), [#allocation2]  }
  0x13   : > { %v155_v6 = vrot.slane (!%p106_p9), %v140_v3, %v154_v4  ;;  %v144_v7 = vrot.slane (!%p106_p9), %v140_v3, %v143_v5  ;;  %v166_v9 = vrot.slane (!%p106_p9), %v140_v3, %v165_v8  ;;  %v177_v11 = vrot.slane (!%p106_p9), %v140_v3, %v176_v10  ;;  %p332_p10 = scmp.ne.s32.totalorder (!%p106_p9), %s486_s5, %s331_s14  ;;  %s335_s17 = sshll.u32 (!%p106_p9), %s395_s16, 4  ;;  %s336_s17 = int_to_ptr.vmem [resolvable:$false] %s335_s17 }
  0x14   : > { %325 = vpow2.f32 (!%p106_p9), %v129_v17  ;;  %s337_s21 = scalar_lea.vmem (!%p106_p9), %s336_s17, 2048  ;;  %p338_p13 = scmp.lt.s32.totalorder (!%p106_p9), %s486_s5, %s336_s17 }
  0x15   : > { %157 = vbcast.lane.b32.xlu1 %v155_v6, 256  ;;  %146 = vbcast.lane.b32.xlu0 %v144_v7, 256  ;;  %p333_p11 = pnand %p332_p10, %p451_p5  ;;  %p339_p0 = scmp.lt.s32.totalorder %s337_s21, %s331_s14 }
  0x17   : > { %p334_p12 = pneg %p333_p11  ;;  %p340_p1 = por %p339_p0, %p338_p13 }
  0x19   : > { %161 = vbcast.lane.b32.xlu1 %v155_v6, 264  ;;  %150 = vbcast.lane.b32.xlu0 %v144_v7, 264  ;;  %p341_p2 = pnand %p340_p1, %p334_p12 }
  0x1c   : > { %v324_v18 = vpop.eup %323 }
  0x1d   : > { %172 = vbcast.lane.b32.xlu1 %v166_v9, 264  ;;  %168 = vbcast.lane.b32.xlu0 %v166_v9, 256  ;;  %v131_v19 = vadd.f32 1.0, %v324_v18 }
  0x1e   : > { %v326_v20 = vpop.eup %325 }
  0x1f   : > { %327 = vrcp.f32 %v131_v19  ;;  %v132_v21 = vadd.f32 1.0, %v326_v20 }
  0x21   : > { %183 = vbcast.lane.b32.xlu1 %v177_v11, 264  ;;  %179 = vbcast.lane.b32.xlu0 %v177_v11, 256  ;;  %329 = vrcp.f32 %v132_v21 }
  0x29   : > { %v328_v22 = vpop.eup %327 }
  0x2b   : > { %v330_v27 = vpop.eup %329 }
  0x87   : > { %v158_v23 = vpop.permute.xlu1 %157  ;;  %v147_v24 = vpop.permute.xlu0 %146 }
  0x88   : > { %v187_v25 = vadd.f32 %v328_v22, %v158_v23  ;;  %v185_v26 = vadd.f32 %v328_v22, %v147_v24 }
  0x8a   : > { %196 = vst.msk [vmem:[%s121_s3 + $0x10] sm:$0xff] %vm193_vm0, %v187_v25  ;;  %194 = vst.msk [vmem:[%s121_s3] sm:$0xff] %vm193_vm0, %v185_v26 }
  0x8b   : > { %v162_v28 = vpop.permute.xlu1 %161  ;;  %v151_v29 = vpop.permute.xlu0 %150 }
  0x8c   : > { %v188_v30 = vadd.f32 %v330_v27, %v162_v28  ;;  %v186_v31 = vadd.f32 %v330_v27, %v151_v29 }
  0x8e   : > { %197 = vst.msk [vmem:[%s121_s3 + $0x18] sm:$0xff] %vm193_vm0, %v188_v30  ;;  %195 = vst.msk [vmem:[%s121_s3 + $0x8] sm:$0xff] %vm193_vm0, %v186_v31 }
  0x8f   : > { %v173_v32 = vpop.permute.xlu1 %172  ;;  %v169_v33 = vpop.permute.xlu0 %168 }
  0x90   : > { %v190_v34 = vadd.f32 %v330_v27, %v173_v32  ;;  %v189_v35 = vadd.f32 %v328_v22, %v169_v33 }
  0x92   : > { %199 = vst.msk [vmem:[%s121_s3 + $0x28] sm:$0xff] %vm193_vm0, %v190_v34  ;;  %198 = vst.msk [vmem:[%s121_s3 + $0x20] sm:$0xff] %vm193_vm0, %v189_v35 }
  0x93   : > { %v184_v36 = vpop.permute.xlu1 %183  ;;  %v180_v37 = vpop.permute.xlu0 %179 }
  0x94   : > { %v192_v38 = vadd.f32 %v330_v27, %v184_v36  ;;  %v191_v39 = vadd.f32 %v328_v22, %v180_v37 }
  0x96   : > { %201 = vst.msk [vmem:[%s121_s3 + $0x38] sm:$0xff] %vm193_vm0, %v192_v38  ;;  %200 = vst.msk [vmem:[%s121_s3 + $0x30] sm:$0xff] %vm193_vm0, %v191_v39 }
  0x97   : > { %344 = shalt.err (!%p341_p2)
}
  0x98   : > { %s345_s22 = scalar_lea.hbm %s484_s8, 1024  ;;  %s349_s25 = scalar_lea.hbm %s535_s2, 2048 }
  0x99   : > { %p346_p3 = scmp.ne.s32.totalorder %s484_s8, %s345_s22  ;;  %p350_p8 = scmp.lt.u32.totalorder %s484_s8, %s535_s2 }
  0x9a   : > { %p351_p9 = scmp.lt.u32.totalorder %s349_s25, %s345_s22  ;;  %p353_p11 = scmp.lt.u32.totalorder %s345_s22, %s484_s8 }
  0x9b   : > { %p347_p4 = pnand %p346_p3, %p451_p5 }
  0x9c   : > { %p352_p10 = por %p351_p9, %p350_p8 }
  0x9d   : > { %p348_p7 = pneg %p347_p4 }
  0x9e   : > { %p354_p12 = por %p353_p11, %p352_p10 }
  0xa0   : > { %p355_p13 = pnand %p354_p12, %p348_p7 }
  0xa2   : > { %358 = shalt.err (!%p355_p13)
}
  0xa3   : > { %s396_s28 = smov 128   ;;  %s397_s29 = smov 8  }
  0xa4   : > { %282 = dma.vmem_to_hbm [thread:$0]  (%p451_p5), %s486_s5, 1024, %s484_s8, %s492_s13, %s396_s28, %s396_s28, %s397_s29  }
  0xa5 PF: > { %p288_p0 = scmp.ge.s32.totalorder %s393_s12, 2  ;;  %s232_s30 = sand.u32 1, %s381_s9  }
  0xa6   : > { %s233_s3 = scalar_lea.sflag [#allocation3], %s232_s30 }
  0xa7   : > { %p285_p1 = pnand %p288_p0, %p455_p6 }
  0xa9   : > { %376 = dma.done.wait (!%p285_p1), %s233_s3, 1024  }
  0xaa   : > { %378 = vsyncadd (!%p285_p1), %s233_s3, 4294966272  ;;  %p12_p2 = scmp.ge.s32.totalorder %s438_s15, 4   ;;  %s538_s9 = smov %s385_s10 }
  0xab   : > { %s539_s10 = smov %s389_s11  ;;  %s540_s11 = smov %s449_s18 }
  0xac   : > { %s541_s12 = smov %s438_s15  ;;  %14 = sbr.rel (!%p12_p2) target bundleno = 3 (0x3), region = 61 }
  0xb3   :  { %238 = vsyncpa [#allocation3], 1 }
  0xb4   :  { %240 = vsyncpa [#allocation3 + $0x1], 1 }

</bundles_post_ra>
